<compile_context>
chip_gen: v6e
topology: v6e:2x2x1
jax: 0.10.0
libtpu: 0.0.40
codegen_flags: <defaults>
</compile_context>

<pallas_src>
import jax
import jax.numpy as jnp
from jax import lax
from jax.experimental import pallas as pl
from jax.experimental.pallas import tpu as pltpu


def _make_kernel(K, C_in, TL, n_time_tiles):
    """Builds the kernel for static (K, C_in, TL, #time-tiles)."""
    Km1 = K - 1

    def kernel(x_ref, w_ref, o_ref, halo_ref):
        # x_ref:    (C_in, TL)           current time tile (time on lanes)
        # w_ref:    (C_out, K*C_in + 1)  packed weights, last column = bias
        # o_ref:    (C_out, TL)
        # halo_ref: (C_in, max(K-1, 1))  last K-1 input cols of previous tile
        x_tile = x_ref[...]

        if Km1 == 0:
            x_ext = x_tile
        elif n_time_tiles == 1:
            # Single time tile per batch element: causal left-halo is zeros.
            x_ext = jnp.concatenate(
                [jnp.zeros((C_in, Km1), x_tile.dtype), x_tile], axis=1)
        else:
            li = pl.program_id(1)

            @pl.when(li == 0)
            def _():
                # First tile of each batch element: zero halo == causal pad.
                halo_ref[...] = jnp.zeros_like(halo_ref)

            x_ext = jnp.concatenate([halo_ref[...], x_tile], axis=1)

        # im2col: cols[k*C_in + ci, t] = x[ci, t + k - (K-1)] (zero out of range);
        # the final ones-row multiplies the bias column of the packed weight.
        parts = [x_ext[:, k:k + TL] for k in range(K)]
        parts.append(jnp.ones((1, TL), x_tile.dtype))
        cols = jnp.concatenate(parts, axis=0)          # (K*C_in + 1, TL)

        # Single MXU matmul, contraction depth K*C_in + 1, f32 accumulation.
        o_ref[...] = jnp.dot(
            w_ref[...], cols, preferred_element_type=jnp.float32
        ).astype(o_ref.dtype)

        if Km1 > 0 and n_time_tiles > 1:
            # Carry the tail of this tile as the next tile's causal halo.
            halo_ref[...] = x_tile[:, TL - Km1:]

    return kernel


def causal_conv1d(x, weight, bias, *, time_tile=512):
    """Causal 1-D convolution matching PyTorch CausalConv1d.forward.

    Args:
      x:      (N, C_in, L)     float32
      weight: (C_out, C_in, K) float32 (PyTorch Conv1d weight layout)
      bias:   (C_out,)         float32
      time_tile: target time steps per grid step (rounded to a multiple of 128
        when the time axis is actually tiled).
    Returns:
      (N, C_out, L) float32
    """
    N, C_in, L = x.shape
    C_out, _, K = weight.shape

    # Fold the K taps (and the bias) into a single packed weight matrix:
    #   w_packed[co, k*C_in + ci] = weight[co, ci, k];  last column = bias.
    w_packed = jnp.transpose(weight, (0, 2, 1)).reshape(C_out, K * C_in)
    w_aug = jnp.concatenate([w_packed, bias[:, None]], axis=1)

    # Time tiling: when tiled, TL must be a multiple of 128 (lane dim); a single
    # tile may use the full arbitrary L. If needed, pad L up to a multiple of TL
    # on the right (causal conv never looks right; padded outputs are sliced off).
    if L <= time_tile:
        TL, L_pad = L, L
    else:
        TL = max(128, (time_tile // 128) * 128)
        L_pad = pl.cdiv(L, TL) * TL
    n_lt = L_pad // TL
    x_p = x if L_pad == L else jnp.pad(x, ((0, 0), (0, 0), (0, L_pad - L)))

    # Explicit VMEM budget derived from the tile (double-buffered in/out), with
    # headroom under v7x's 64 MiB physical VMEM.
    per_step_bytes = 4 * TL * (C_in + C_out)
    vmem_limit = int(min(48 * 2**20, max(16 * 2**20, 6 * per_step_bytes)))

    kernel = _make_kernel(K, C_in, TL, n_lt)

    out = pl.pallas_call(
        kernel,
        out_shape=jax.ShapeDtypeStruct((N, C_out, L_pad), x.dtype),
        grid_spec=pltpu.PrefetchScalarGridSpec(
            num_scalar_prefetch=0,
            grid=(N, n_lt),
            in_specs=[
                # (batch squeezed, all channels, one time tile); time on lanes.
                # TODO(synk): once confirmed memory-bound at scale, consider
                # pipeline_mode=pl.Buffered(3) here (not on v7x if VMEM-tight).
                pl.BlockSpec((None, C_in, TL), lambda n, l: (n, 0, l)),
                # Packed weights stay resident across the whole grid.
                pl.BlockSpec((C_out, K * C_in + 1), lambda n, l: (0, 0)),
            ],
            out_specs=pl.BlockSpec((None, C_out, TL), lambda n, l: (n, 0, l)),
            scratch_shapes=[pltpu.VMEM((C_in, max(K - 1, 1)), x.dtype)],
        ),
        compiler_params=pltpu.CompilerParams(
            # Batch shards across TensorCores (v7x megacore); time tiles are
            # sequential because the halo scratch carries state between them.
            dimension_semantics=("parallel", "arbitrary"),
            vmem_limit_bytes=vmem_limit,
        ),
    )(x_p, w_aug)

    return out if L_pad == L else out[:, :, :L]


def _reference(x, weight, bias):
    # Independent reference: lax conv with causal left padding.
    K = weight.shape[-1]
    return lax.conv_general_dilated(
        x, weight,
        window_strides=(1,),
        padding=((K - 1, 0),),
        dimension_numbers=("NCH", "OIH", "NCH"),
    ) + bias[None, :, None]


if __name__ == "__main__":
    # Small shapes consistent with the module: batch=2, in_channels=4,
    # out_channels=6, seq length=16, kernel_size=3.
    N, C_in, C_out, L, K = 2, 4, 6, 16, 3

    key = jax.random.PRNGKey(0)
    kx, kw, kb = jax.random.split(key, 3)
    x = jax.random.normal(kx, (N, C_in, L), dtype=jnp.float32)
    weight = jax.random.normal(kw, (C_out, C_in, K), dtype=jnp.float32) * 0.1
    bias = jax.random.normal(kb, (C_out,), dtype=jnp.float32) * 0.1

    out = jax.block_until_ready(causal_conv1d(x, weight, bias))
    ref = _reference(x, weight, bias)
    assert out.shape == (N, C_out, L), out.shape
    assert jnp.allclose(out, ref, atol=1e-4, rtol=1e-4), \
        float(jnp.max(jnp.abs(out - ref)))

    # Second, still-small check exercising the time-tiled + halo-carry path
    # (TL=128, 3 time tiles per batch element).
    L2 = 384
    x2 = jax.random.normal(kx, (N, C_in, L2), dtype=jnp.float32)
    out2 = jax.block_until_ready(causal_conv1d(x2, weight, bias, time_tile=128))
    ref2 = _reference(x2, weight, bias)
    assert out2.shape == (N, C_out, L2), out2.shape
    assert jnp.allclose(out2, ref2, atol=1e-4, rtol=1e-4), \
        float(jnp.max(jnp.abs(out2 - ref2)))

    print("KERNEL_OK")
</pallas_src>

<mosaic_0001>
module attributes {stable_mosaic.version = 11 : i64} {
  func.func @kernel(%arg0: i32, %arg1: i32, %arg2: memref<1x4x16xf32, #tpu.memory_space<vmem>>, %arg3: memref<6x13xf32, #tpu.memory_space<vmem>>, %arg4: memref<1x6x16xf32, #tpu.memory_space<vmem>>, %arg5: memref<4x2xf32, #tpu.memory_space<vmem>>) attributes {dimension_semantics = [#tpu.dimension_semantics<parallel>, #tpu.dimension_semantics<arbitrary>], iteration_bounds = array<i64: 2, 1>, scalar_prefetch = 0 : i64, scratch_operands = 1 : i64, tpu.core_type = #tpu.core_type<tc>, window_params = [{transform_indices = @transform_0, window_bounds = array<i64: 1, 4, 16>}, {pipeline_mode = #tpu.pipeline_mode<synchronous>, transform_indices = @transform_1, window_bounds = array<i64: 6, 13>}, {transform_indices = @transform_2, window_bounds = array<i64: 1, 6, 16>}]} {
    %c0 = arith.constant 0 : index
    %c0_0 = arith.constant 0 : index
    %c0_1 = arith.constant 0 : index
    %0 = vector.load %arg2[%c0, %c0_0, %c0_1] : memref<1x4x16xf32, #tpu.memory_space<vmem>>, vector<1x4x16xf32>
    %1 = vector.shape_cast %0 : vector<1x4x16xf32> to vector<4x16xf32>
    %cst = arith.constant 0.000000e+00 : f32
    %2 = vector.broadcast %cst : f32 to vector<4x2xf32>
    %3 = tpu.concatenate %2, %1 in 1 : vector<4x2xf32>, vector<4x16xf32> -> vector<4x18xf32>
    %4 = vector.extract_strided_slice %3 {offsets = [0, 0], sizes = [4, 16], strides = [1, 1]} : vector<4x18xf32> to vector<4x16xf32>
    %5 = vector.extract_strided_slice %3 {offsets = [0, 1], sizes = [4, 16], strides = [1, 1]} : vector<4x18xf32> to vector<4x16xf32>
    %6 = vector.extract_strided_slice %3 {offsets = [0, 2], sizes = [4, 16], strides = [1, 1]} : vector<4x18xf32> to vector<4x16xf32>
    %cst_2 = arith.constant 1.000000e+00 : f32
    %7 = vector.broadcast %cst_2 : f32 to vector<1x16xf32>
    %8 = tpu.concatenate %4, %5, %6, %7 in 0 : vector<4x16xf32>, vector<4x16xf32>, vector<4x16xf32>, vector<1x16xf32> -> vector<13x16xf32>
    %c0_3 = arith.constant 0 : index
    %c0_4 = arith.constant 0 : index
    %9 = vector.load %arg3[%c0_3, %c0_4] : memref<6x13xf32, #tpu.memory_space<vmem>>, vector<6x13xf32>
    %cst_5 = arith.constant dense<0.000000e+00> : vector<6x16xf32>
    %10 = tpu.matmul %9, %8, %cst_5 {dimension_numbers = #tpu.dot_dimension_numbers<[1], [0], [0], [1], [0, 0, 1, 1], [], []>} : vector<6x13xf32>, vector<13x16xf32>, vector<6x16xf32> -> vector<6x16xf32>
    %c0_6 = arith.constant 0 : index
    %c0_7 = arith.constant 0 : index
    %c0_8 = arith.constant 0 : index
    %11 = vector.load %arg4[%c0_6, %c0_7, %c0_8] : memref<1x6x16xf32, #tpu.memory_space<vmem>>, vector<1x6x16xf32>
    %12 = vector.shape_cast %11 : vector<1x6x16xf32> to vector<6x16xf32>
    %13 = vector.shape_cast %10 : vector<6x16xf32> to vector<1x6x16xf32>
    tpu.vector_store %arg4[%c0_6, %c0_7, %c0_8], %13 {strides = array<i32>} : memref<1x6x16xf32, #tpu.memory_space<vmem>>, vector<1x6x16xf32>,
    return
  }
  func.func @transform_0(%arg0: i32, %arg1: i32) -> (i32, i32, i32) {
    %c0_i32 = arith.constant 0 : i32
    %c0_i32_0 = arith.constant 0 : i32
    return %arg0, %c0_i32, %arg1 : i32, i32, i32
  }
  func.func @transform_1(%arg0: i32, %arg1: i32) -> (i32, i32) {
    %c0_i32 = arith.constant 0 : i32
    %c0_i32_0 = arith.constant 0 : i32
    %c0_i32_1 = arith.constant 0 : i32
    return %c0_i32, %c0_i32_0 : i32, i32
  }
  func.func @transform_2(%arg0: i32, %arg1: i32) -> (i32, i32, i32) {
    %c0_i32 = arith.constant 0 : i32
    %c0_i32_0 = arith.constant 0 : i32
    return %arg0, %c0_i32, %arg1 : i32, i32, i32
  }
}

</mosaic_0001>

<bundles_post_ra>
// kernel: tpu_custom_call.1
= control target key start
LH: loop header
LB: loop body
LE: loop exit
PB: predicated region body
PF: predicated region fallthrough
CT: control target
= control target key end

     0   :  { %7 = vsyncpa [#allocation4], 0  ;;  %s737_s0 = inlined_call_operand.hbm [shape: f32[2,4,16], index: 0, kind: input, shape index: {}]   ;;  %s738_s1 = inlined_call_operand.hbm [shape: f32[6,13], index: 1, kind: input, shape index: {}]   ;;  %s739_s2 = inlined_call_operand.vmem [shape: f32[2,6,16], index: 2, kind: output, shape index: {}]  }
   0x1   :  { %9 = vsyncpa [#allocation4 + $0x1], 0 }
   0x2   :  { %10 = vsyncpa [#allocation6], 0  ;;  %s616_s9 = smov 0   ;;  %s618_s10 = smov 0  }
   0x3   :  { %s620_s11 = smov 0   ;;  %s622_s12 = smov 0  }
   0x4   :  { %s624_s13 = smov 0   ;;  %s626_s14 = smov 0  }
   0x5 LB: > { %s388_s15 = sadd.s32 4294967295, %s592_s14   ;;  %p50_p0 = scmp.ne.s32.totalorder %s576_s10, %s572_s9  ;;  %s592_s14 = sphi %s626_s14, %s16_s14   ;;  %s588_s13 = sphi %s624_s13, %s749_s13   ;;  %s584_s12 = sphi %s622_s12, %s748_s12   ;;  %s580_s11 = sphi %s620_s11, %s747_s11   ;;  %s576_s10 = sphi %s618_s10, %s746_s10   ;;  %s572_s9 = sphi %s616_s9, %s745_s9  }
   0x6   : > { %p646_p1 = scmp.eq.s32.totalorder %s388_s15, 0  ;;  %p390_p2 = scmp.ge.s32.totalorder %s592_s14, 1 }
   0x7   : > { %p110_p3 = scmp.lt.s32.totalorder %s592_s14, 3  ;;  %s594_s19 = smov [#allocation5]  }
   0x8   : > { %p654_p4 = por %p646_p1, %p50_p0  ;;  %s123_s20 = sshll.u32 %s594_s19, 4  ;;  %s124_s20 = int_to_ptr.vmem [resolvable:$true] %s123_s20 }
   0x9   : > { %p658_p5 = pnand %p390_p2, %p110_p3  ;;  %s28_s22 = sadd.s32 1, %s588_s13 }
   0xa   : > { %s37_s23 = sadd.s32 1, %s580_s11  ;;  %p30_p8 = scmp.ge.s32.totalorder %s28_s22, 2 }
   0xb   : > { %p419_p6 = pneg %p658_p5  ;;  %s495_s24 = scalar_lea.vmem %s124_s20, 128 }
   0xc   : > { %p496_p10 = scmp.ne.s32.totalorder %s124_s20, %s495_s24  ;;  %p503_p13 = scmp.lt.s32.totalorder %s124_s20, %s124_s20 }
   0xd   : > { %p666_p7 = pnand %p419_p6, %p646_p1  ;;  %p504_p0 = scmp.lt.s32.totalorder %s495_s24, %s495_s24 }
   0xf   : > { %p486_p9 = pneg %p666_p7  ;;  %p505_p2 = por %p504_p0, %p503_p13 }
  0x11   : > { %p498_p11 = pnand %p496_p10, %p486_p9 }
  0x13   : > { %p499_p12 = pneg %p498_p11 }
  0x15   : > { %p506_p3 = pnand %p505_p2, %p499_p12 }
  0x17   : > { %509 = shalt.err (!%p506_p3)
}
  0x18   : > { %422 = dma.hbm_to_vmem [thread:$0]  (!%p666_p7), %s738_s1, 128, %s124_s20, [#allocation6]  }
  0x19   : > { %s751_s22 = smov (%p30_p8, %s28_s22), 0  ;;  %p44_p6 = scmp.ne.s32.totalorder %s580_s11, %s576_s10 }
  0x1a   : > { %p45_p9 = scmp.eq.s32.totalorder %s592_s14, 0  ;;  %s32_s27 = ssub.s32 %s588_s13, %s751_s22 }
  0x1b   : > { %p428_p10 = scmp.lt.s32.totalorder %s592_s14, 2  ;;  %p35_p11 = scmp.eq.s32.totalorder %s32_s27, 0 }
  0x1c   : > { %p46_p12 = por %p45_p9, %p44_p6  ;;  %s134_s28 = sand.u32 1, %s580_s11  }
  0x1d   : > { %s394_s29 = sshll.u32 %s588_s13, 6  ;;  %s393_s3 = sshll.u32 %s134_s28, 2 }
  0x1e   : > { %s690_s30 = scalar_select %p35_p11, %s580_s11, %s37_s23  }
  0x1f   : > { %s144_s6 = scalar_lea.hbm %s737_s0, %s394_s29  ;;  %s138_s7 = scalar_lea.vmem [#allocation3], %s393_s3 }
  0x20   : > { %s146_s8 = sshll.u32 %s138_s7, 4  ;;  %p695_p7 = pnand %p428_p10, %p46_p12  ;;  %s147_s8 = int_to_ptr.vmem [resolvable:$true] %s146_s8 }
  0x21   : > { %s135_s15 = scalar_lea.sflag [#allocation4], %s134_s28  ;;  %s523_s19 = scalar_lea.vmem %s147_s8, 64 }
  0x22   : > { %p512_p8 = pneg %p695_p7  ;;  %p524_p13 = scmp.ne.s32.totalorder %s147_s8, %s523_s19 }
  0x23   : > { %s595_s20 = smov [#allocation3]  }
  0x24   : > { %p526_p0 = pnand %p524_p13, %p512_p8  ;;  %s528_s21 = sshll.u32 %s595_s20, 4  ;;  %s529_s21 = int_to_ptr.vmem [resolvable:$false] %s528_s21 }
  0x25   : > { %s530_s23 = scalar_lea.vmem %s529_s21, 128  ;;  %p531_p3 = scmp.lt.s32.totalorder %s147_s8, %s529_s21 }
  0x26   : > { %p527_p2 = pneg %p526_p0  ;;  %p532_p6 = scmp.lt.s32.totalorder %s530_s23, %s523_s19 }
  0x28   : > { %p533_p9 = por %p532_p6, %p531_p3 }
  0x2a   : > { %p534_p10 = pnand %p533_p9, %p527_p2 }
  0x2c   : > { %537 = shalt.err (!%p534_p10)
}
  0x2d   : > { %426 = dma.hbm_to_vmem [thread:$0]  (!%p695_p7), %s144_s6, 64, %s147_s8, %s135_s15  }
  0x2e   : > { %155 = sbr.rel (%p658_p5) target bundleno = 485 (0x1e5), region = 28  ;;  %s157_s24 = sand.u32 (!%p658_p5), 1, %s576_s10  }
  0x2f   : > { %s396_s25 = sshll.u32 (!%p658_p5), %s157_s24, 2  ;;  %s158_s26 = scalar_lea.sflag (!%p658_p5), [#allocation4], %s157_s24 }
  0x30   : > { %s161_s27 = scalar_lea.vmem (!%p658_p5), [#allocation3], %s396_s25 }
  0x33   : > { %563 = dma.done.wait (%p654_p4), %s158_s26, 64  }
  0x34   : > { %565 = vsyncadd (%p654_p4), %s158_s26, 4294967232 }
  0x35   : > { %567 = dma.done.wait (%p646_p1), [#allocation6], 128  }
  0x36   : > { %569 = vsyncadd (%p646_p1), [#allocation6], 4294967168  ;;  %v195_v0 = vld [vmem:[%s161_s27] sm:$0xf]  ;;  %s596_s18 = smov 2   ;;  %v597_v1 = vmov 0.0  }
  0x37   : > { %197 = vrot.lane.b32.xlu0 %v195_v0, %s596_s18  ;;  %406 = vmatprep.subr.mxu0 %v597_v1  ;;  %vm598_vm0 = vmmov 0   ;;  %vm200_vm1 = vcmask 15360   ;;  %s599_s28 = smov 126   ;;  %s600_s17 = smov 127   ;;  %vm210_vm2 = vcmask 1043456   ;;  %vm218_vm3 = vcmask 1044480  }
  0x38   : > { %410 = vmatprep.mubr.msk.f32.mxu0 %vm598_vm0, %v597_v1  ;;  %v213_v8 = vld [vmem:[#allocation5] sm:$0x3f]  ;;  %vm214_vm4 = vcmask 105472   ;;  %p188_p1 = scmp.lt.s32.totalorder %s584_s12, 1  ;;  %vm292_vm5 = vcmask 128000  }
  0x3a   : > { %s753_s12 = smov (!%p188_p1, %s584_s12), 1 }
  0x3b   : > { %s398_s16 = sshll.u32 %s753_s12, 3 }
  0x3c   : > { %s194_s4 = scalar_lea.vmem %s739_s2, %s398_s16 }
  0xa9   : > { %v198_v2 = vpop.permute.xlu0 %197 }
  0xaa   : > { %v201_v3 = vsel %vm200_vm1, 0.0, %v198_v2 }
  0xab   : > { %207 = vrot.lane.b32.xlu0 %v201_v3, %s599_s28  ;;  %v203_v4 = vrot.slane %v201_v3, 4 }
  0xad   : > { %204 = vrot.lane.b32.xlu1 %v203_v4, %s600_s17 }
 0x11d   : > { %v208_v5 = vpop.permute.xlu0 %207 }
 0x11e   : > { %v212_v6 = vsel %vm210_vm2, %v208_v5, 1.0 }
 0x11f   : > { %407 = vmatpush3.msk.msra.mxu0 %vm218_vm3, %v212_v6  ;;  %v205_v7 = vpop.permute.xlu1 %204 }
 0x120   : > { %408 = vmatprep.subr.mxu0 %v597_v1  ;;  %v211_v9 = vsel %vm210_vm2, %v201_v3, %v205_v7 }
 0x121   : > { %409 = vmatpush3.msra.mxu0 %v211_v9 }
 0x122   : > { %411 = vmatmul.mubr.msk.f32.vlgmr.msra.gmra.mxu0 %vm214_vm4, %v213_v8 }
 0x1e2   : > { %v288_v10 = vpop.f32.mrf.mxu0 }
 0x1e3   : > { %293 = vst.msk [vmem:[%s194_s4] sm:$0x3f] %vm292_vm5, %v288_v10 }
 0x1e4   : > { %v412_v11 = vpop.f32.mrf.mxu0 }
 0x1e5 PF: > { %s16_s14 = sadd.s32 1, %s592_s14   ;;  %s745_s9 = smov %s576_s10 }
 0x1e6   : > { %p13_p4 = scmp.ge.s32.totalorder %s16_s14, 4   ;;  %s746_s10 = smov %s580_s11 }
 0x1e7   : > { %s747_s11 = smov %s690_s30  ;;  %s748_s12 = smov %s588_s13 }
 0x1e8   : > { %s749_s13 = smov %s751_s22  ;;  %15 = sbr.rel (!%p13_p4) target bundleno = 5 (0x5), region = 72 }
 0x1ed   :  { %319 = vsyncpa [#allocation4], 1 }
 0x1ee   :  { %321 = vsyncpa [#allocation4 + $0x1], 1 }
 0x1ef   :  { %322 = vsyncpa [#allocation6], 1 }

</bundles_post_ra>
